<compile_context>
chip_gen: v5e
topology: v5e:2x2
jax: 0.10.0
libtpu: 0.0.40
codegen_flags: <defaults>
</compile_context>

<pallas_src>
import jax
import jax.numpy as jnp
from jax import lax
from jax.experimental import pallas as pl
from jax.experimental.pallas import tpu as pltpu


def _make_base_op_kernel(chunk_R, n_chunks, inv_f, pad_cols):
    """Builds the kernel closure.

    Block shapes seen by the kernel:
      x_ref, o_ref:        (block_R, Cg, HWp)  transport dtype
      gamma_ref, beta_ref: (block_R, Cg, 1)    float32
    block_R == chunk_R * n_chunks; inv_f = 1/(Cg*HW_true); pad_cols = Cg*(HWp-HW).
    """
    eps = 1e-5  # torch.nn.GroupNorm default

    def kernel(x_ref, gamma_ref, beta_ref, o_ref):
        def process_chunk(r0):
            # --- op 'act': ReLU (compute in f32, chunk-sized temporaries only) ---
            x = x_ref[pl.ds(r0, chunk_R)].astype(jnp.float32)      # (cR, Cg, HWp)
            y = jnp.maximum(x, 0.0)

            # --- op 'weight': dropout(rate=0) is None; weight_call is identity ---

            # --- op 'norm': GroupNorm per row, two-pass stats + fused affine ---
            s1 = jnp.sum(jnp.sum(y, axis=2, keepdims=True), axis=1, keepdims=True)
            mean = s1 * inv_f                                       # (cR, 1, 1)
            d = y - mean
            ss = jnp.sum(jnp.sum(d * d, axis=2, keepdims=True), axis=1, keepdims=True)
            if pad_cols:
                # padded (zero) columns contributed mean^2 each to the centered sum
                ss = ss - float(pad_cols) * (mean * mean)
            var = jnp.maximum(ss * inv_f, 0.0)
            rstd = lax.rsqrt(var + eps)                             # (cR, 1, 1)

            gamma = gamma_ref[pl.ds(r0, chunk_R)]                   # (cR, Cg, 1) f32
            beta = beta_ref[pl.ds(r0, chunk_R)]                     # (cR, Cg, 1) f32
            scale = gamma * rstd
            shift = beta - mean * scale
            o_ref[pl.ds(r0, chunk_R)] = (y * scale + shift).astype(o_ref.dtype)

        if n_chunks == 1:
            process_chunk(0)
        else:
            def body(c, carry):
                process_chunk(pl.multiple_of(c * chunk_R, chunk_R))
                return carry
            lax.fori_loop(0, n_chunks, body, 0, unroll=(n_chunks <= 8))

    return kernel


def base_op_forward(x_nchw, gamma, beta, *,
                    target_block_bytes=4 << 20,
                    target_chunk_bytes=512 << 10):
    """BaseOp.forward with default config (act_weight_norm, relu, gn, affine).

    x_nchw: (N, C, H, W)  (f32 or bf16 -- transport dtype is preserved)
    gamma, beta: (C,)     GroupNorm affine params (kept in float32)
    """
    N, C, H, W = x_nchw.shape
    # norm is after 'weight' -> uses out_channels; identity weight_call => same C.
    G = 1 if C % 16 != 0 else C // 16
    Cg = C // G
    HW = H * W
    HWp = ((HW + 127) // 128) * 128            # lane-dense trailing dim
    R = N * G

    x3 = x_nchw.reshape(R, Cg, HW)
    if HWp != HW:
        x3 = jnp.pad(x3, ((0, 0), (0, 0), (0, HWp - HW)))

    # Tiny per-row affine params, kept in f32 (matches PyTorch; no bandwidth benefit
    # to downcasting ~R*Cg elements).
    gamma_rows = jnp.tile(gamma.astype(jnp.float32).reshape(G, Cg), (N, 1)).reshape(R, Cg, 1)
    beta_rows = jnp.tile(beta.astype(jnp.float32).reshape(G, Cg), (N, 1)).reshape(R, Cg, 1)

    itemsize = x3.dtype.itemsize
    row_bytes = Cg * HWp * itemsize

    # Chunk (in-kernel f32 working set) ~512 KiB of input rows.
    chunk_R = int(max(1, min(R, target_chunk_bytes // max(row_bytes, 1))))
    if R >= 2:
        # Guarantee >= 2 grid steps so "parallel" can shard across v7x's 2 TCs.
        chunk_R = min(chunk_R, (R + 1) // 2)

    # Block (DMA tile) ~target_block_bytes, a multiple of chunk_R.
    chunks_per_block = int(max(1, target_block_bytes // max(chunk_R * row_bytes, 1)))
    block_R = chunk_R * chunks_per_block
    num_blocks = max(2 if R > chunk_R else 1, pl.cdiv(R, block_R))
    # Re-pick block_R so it (nearly) divides R -> no near-empty tail step.
    block_R = chunk_R * pl.cdiv(pl.cdiv(R, num_blocks), chunk_R)
    num_blocks = pl.cdiv(R, block_R)
    n_chunks = block_R // chunk_R

    # Explicit VMEM budget: double-buffered in + out blocks, f32 chunk temporaries,
    # tiny param blocks; 1.5x headroom, capped at 64 MiB (v7x physical per TC).
    block_bytes = block_R * row_bytes
    chunk_f32_bytes = chunk_R * Cg * HWp * 4
    vmem_need = 4 * block_bytes + 6 * chunk_f32_bytes + 4 * block_R * Cg * 4 + (1 << 20)
    vmem_limit = int(min(64 << 20, max(int(1.5 * vmem_need), 16 << 20)))

    elems = R * Cg * HWp
    cost = pl.CostEstimate(
        flops=8 * elems,                                   # relu + stats + scale/shift
        transcendentals=R,                                 # one rsqrt per group
        bytes_accessed=2 * elems * itemsize + 2 * R * Cg * 4,
    )

    kernel = _make_base_op_kernel(chunk_R, n_chunks, 1.0 / float(Cg * HW),
                                  Cg * (HWp - HW))

    out3 = pl.pallas_call(
        kernel,
        out_shape=jax.ShapeDtypeStruct((R, Cg, HWp), x3.dtype),
        grid=(num_blocks,),
        in_specs=[
            pl.BlockSpec((block_R, Cg, HWp), lambda i: (i, 0, 0)),
            pl.BlockSpec((block_R, Cg, 1), lambda i: (i, 0, 0)),
            pl.BlockSpec((block_R, Cg, 1), lambda i: (i, 0, 0)),
        ],
        out_specs=pl.BlockSpec((block_R, Cg, HWp), lambda i: (i, 0, 0)),
        compiler_params=pltpu.CompilerParams(
            dimension_semantics=("parallel",),
            vmem_limit_bytes=vmem_limit,
        ),
        cost_estimate=cost,
    )(x3, gamma_rows, beta_rows)

    if HWp != HW:
        out3 = out3[:, :, :HW]
    return out3.reshape(N, C, H, W)


def _reference_forward(x_nchw, gamma, beta):
    """Pure-JAX reference (mirrors torch: ReLU -> GroupNorm(group, C, affine))."""
    N, C, H, W = x_nchw.shape
    G = 1 if C % 16 != 0 else C // 16
    eps = 1e-5
    x = jnp.maximum(x_nchw.astype(jnp.float32), 0.0)
    xg = x.reshape(N, G, -1)
    mean = jnp.mean(xg, axis=-1, keepdims=True)
    var = jnp.mean((xg - mean) ** 2, axis=-1, keepdims=True)
    xn = ((xg - mean) / jnp.sqrt(var + eps)).reshape(N, C, H, W)
    return xn * gamma.reshape(1, C, 1, 1) + beta.reshape(1, C, 1, 1)


if __name__ == "__main__":
    key = jax.random.PRNGKey(0)
    fwd = jax.jit(base_op_forward)

    configs = [
        (2, 4, 16, 16),   # C % 16 != 0 -> G=1; HW=256 already lane-dense
        (2, 32, 7, 7),    # C % 16 == 0 -> G=2, Cg=16; HW=49 padded to 128
    ]
    for (N, C, H, W) in configs:
        kx, kg, kb, key = jax.random.split(key, 4)
        x = jax.random.normal(kx, (N, C, H, W), dtype=jnp.float32)
        gamma = 1.0 + 0.1 * jax.random.normal(kg, (C,), dtype=jnp.float32)
        beta = 0.1 * jax.random.normal(kb, (C,), dtype=jnp.float32)

        out = jax.block_until_ready(fwd(x, gamma, beta))
        ref = _reference_forward(x, gamma, beta)
        assert out.shape == (N, C, H, W)
        assert jnp.allclose(out, ref, atol=1e-4, rtol=1e-4), (
            f"mismatch vs reference for shape {(N, C, H, W)}")

    print("KERNEL_OK")
</pallas_src>

<mosaic_0001>
module attributes {stable_mosaic.version = 11 : i64} {
  func.func @kernel(%arg0: i32, %arg1: memref<1x4x256xf32, #tpu.memory_space<vmem>>, %arg2: memref<1x4x1xf32, #tpu.memory_space<vmem>>, %arg3: memref<1x4x1xf32, #tpu.memory_space<vmem>>, %arg4: memref<1x4x256xf32, #tpu.memory_space<vmem>>) attributes {dimension_semantics = [#tpu.dimension_semantics<parallel>], iteration_bounds = array<i64: 2>, scalar_prefetch = 0 : i64, scratch_operands = 0 : i64, tpu.core_type = #tpu.core_type<tc>, window_params = [{transform_indices = @transform_0, window_bounds = array<i64: 1, 4, 256>}, {transform_indices = @transform_1, window_bounds = array<i64: 1, 4, 1>}, {transform_indices = @transform_2, window_bounds = array<i64: 1, 4, 1>}, {transform_indices = @transform_3, window_bounds = array<i64: 1, 4, 256>}]} {
    %c0 = arith.constant 0 : index
    %c0_0 = arith.constant 0 : index
    %c0_1 = arith.constant 0 : index
    %0 = vector.load %arg1[%c0, %c0_0, %c0_1] : memref<1x4x256xf32, #tpu.memory_space<vmem>>, vector<1x4x256xf32>
    %cst = arith.constant 0.000000e+00 : f32
    %1 = vector.broadcast %cst : f32 to vector<1x4x256xf32>
    %2 = arith.maximumf %0, %1 : vector<1x4x256xf32>
    %cst_2 = arith.constant dense<0.000000e+00> : vector<1x4xf32>
    %3 = vector.multi_reduction <add>, %2, %cst_2 [2] : vector<1x4x256xf32> to vector<1x4xf32>
    %4 = vector.shape_cast %3 : vector<1x4xf32> to vector<1x4x1xf32>
    %cst_3 = arith.constant dense<0.000000e+00> : vector<1x1xf32>
    %5 = vector.multi_reduction <add>, %4, %cst_3 [1] : vector<1x4x1xf32> to vector<1x1xf32>
    %6 = vector.shape_cast %5 : vector<1x1xf32> to vector<1x1x1xf32>
    %cst_4 = arith.constant 9.765625E-4 : f32
    %7 = vector.broadcast %cst_4 : f32 to vector<1x1x1xf32>
    %8 = arith.mulf %6, %7 : vector<1x1x1xf32>
    %9 = vector.broadcast %8 : vector<1x1x1xf32> to vector<1x4x256xf32>
    %10 = arith.subf %2, %9 : vector<1x4x256xf32>
    %11 = arith.mulf %10, %10 : vector<1x4x256xf32>
    %cst_5 = arith.constant dense<0.000000e+00> : vector<1x4xf32>
    %12 = vector.multi_reduction <add>, %11, %cst_5 [2] : vector<1x4x256xf32> to vector<1x4xf32>
    %13 = vector.shape_cast %12 : vector<1x4xf32> to vector<1x4x1xf32>
    %cst_6 = arith.constant dense<0.000000e+00> : vector<1x1xf32>
    %14 = vector.multi_reduction <add>, %13, %cst_6 [1] : vector<1x4x1xf32> to vector<1x1xf32>
    %15 = vector.shape_cast %14 : vector<1x1xf32> to vector<1x1x1xf32>
    %cst_7 = arith.constant 9.765625E-4 : f32
    %16 = vector.broadcast %cst_7 : f32 to vector<1x1x1xf32>
    %17 = arith.mulf %15, %16 : vector<1x1x1xf32>
    %cst_8 = arith.constant 0.000000e+00 : f32
    %18 = vector.broadcast %cst_8 : f32 to vector<1x1x1xf32>
    %19 = arith.maximumf %17, %18 : vector<1x1x1xf32>
    %cst_9 = arith.constant 9.99999974E-6 : f32
    %20 = vector.broadcast %cst_9 : f32 to vector<1x1x1xf32>
    %21 = arith.addf %19, %20 : vector<1x1x1xf32>
    %22 = math.rsqrt %21 : vector<1x1x1xf32>
    %c0_10 = arith.constant 0 : index
    %c0_11 = arith.constant 0 : index
    %c0_12 = arith.constant 0 : index
    %23 = vector.load %arg2[%c0_10, %c0_11, %c0_12] : memref<1x4x1xf32, #tpu.memory_space<vmem>>, vector<1x4x1xf32>
    %c0_13 = arith.constant 0 : index
    %c0_14 = arith.constant 0 : index
    %c0_15 = arith.constant 0 : index
    %24 = vector.load %arg3[%c0_13, %c0_14, %c0_15] : memref<1x4x1xf32, #tpu.memory_space<vmem>>, vector<1x4x1xf32>
    %25 = vector.broadcast %22 : vector<1x1x1xf32> to vector<1x4x1xf32>
    %26 = arith.mulf %23, %25 : vector<1x4x1xf32>
    %27 = vector.broadcast %8 : vector<1x1x1xf32> to vector<1x4x1xf32>
    %28 = arith.mulf %27, %26 : vector<1x4x1xf32>
    %29 = arith.subf %24, %28 : vector<1x4x1xf32>
    %30 = vector.broadcast %26 : vector<1x4x1xf32> to vector<1x4x256xf32>
    %31 = arith.mulf %2, %30 : vector<1x4x256xf32>
    %32 = vector.broadcast %29 : vector<1x4x1xf32> to vector<1x4x256xf32>
    %33 = arith.addf %31, %32 : vector<1x4x256xf32>
    %c0_16 = arith.constant 0 : index
    %c0_17 = arith.constant 0 : index
    %c0_18 = arith.constant 0 : index
    %34 = vector.load %arg4[%c0_16, %c0_17, %c0_18] : memref<1x4x256xf32, #tpu.memory_space<vmem>>, vector<1x4x256xf32>
    tpu.vector_store %arg4[%c0_16, %c0_17, %c0_18], %33 {strides = array<i32>} : memref<1x4x256xf32, #tpu.memory_space<vmem>>, vector<1x4x256xf32>,
    return
  }
  func.func @transform_0(%arg0: i32) -> (i32, i32, i32) {
    %c0_i32 = arith.constant 0 : i32
    %c0_i32_0 = arith.constant 0 : i32
    %c0_i32_1 = arith.constant 0 : i32
    return %arg0, %c0_i32, %c0_i32_0 : i32, i32, i32
  }
  func.func @transform_1(%arg0: i32) -> (i32, i32, i32) {
    %c0_i32 = arith.constant 0 : i32
    %c0_i32_0 = arith.constant 0 : i32
    %c0_i32_1 = arith.constant 0 : i32
    return %arg0, %c0_i32, %c0_i32_0 : i32, i32, i32
  }
  func.func @transform_2(%arg0: i32) -> (i32, i32, i32) {
    %c0_i32 = arith.constant 0 : i32
    %c0_i32_0 = arith.constant 0 : i32
    %c0_i32_1 = arith.constant 0 : i32
    return %arg0, %c0_i32, %c0_i32_0 : i32, i32, i32
  }
  func.func @transform_3(%arg0: i32) -> (i32, i32, i32) {
    %c0_i32 = arith.constant 0 : i32
    %c0_i32_0 = arith.constant 0 : i32
    %c0_i32_1 = arith.constant 0 : i32
    return %arg0, %c0_i32, %c0_i32_0 : i32, i32, i32
  }
}

</mosaic_0001>

<bundles_post_ra>
// kernel: base_op_forward.1
= control target key start
LH: loop header
LB: loop body
LE: loop exit
PB: predicated region body
PF: predicated region fallthrough
CT: control target
= control target key end

     0   :  { %s424_s12 = smov 0   ;;  %s466_s0 = inlined_call_operand.vmem [shape: f32[2,4,256], index: 0, kind: input, shape index: {}]   ;;  %s467_s1 = inlined_call_operand.vmem [shape: f32[2,4,1], index: 1, kind: input, shape index: {}]   ;;  %s468_s2 = inlined_call_operand.vmem [shape: f32[2,4,1], index: 2, kind: input, shape index: {}]   ;;  %s469_s3 = inlined_call_operand.vmem [shape: f32[2,4,256], index: 3, kind: output, shape index: {}]  }
   0x1 LB: > { %s365_s13 = sadd.s32 4294967295, %s400_s12   ;;  %p369_p0 = scmp.ge.s32.totalorder %s400_s12, 1  ;;  %s400_s12 = sphi %s424_s12, %s13_s12  }
   0x2   : > { %p155_p1 = scmp.lt.s32.totalorder %s400_s12, 3 }
   0x4   : > { %p156_p2 = pnand %p369_p0, %p155_p1 }
   0x5   : > { %p187_p3 = scmp.lt.s32.totalorder (!%p156_p2), %s365_s13, 1 }
   0x6   : > { %159 = sbr.rel (%p156_p2) target bundleno = 457 (0x1c9), region = 32 }
   0xb   : > { %s471_s13 = smov (!%p187_p3, %s365_s13), 1  ;;  %vm213_vm0 = vcmask 1043456   ;;  %v402_v23 = vmov 0   ;;  %v403_v47 = vmov 839922192  }
   0xc   : > { %s378_s14 = sshll.u32 %s471_s13, 3  ;;  %390 = vset.pattern.permute.xlu1 %v402_v23  ;;  %391 = vset.pattern.permute.xlu0 %v402_v23  ;;  %s372_s18 = sshll.u32 %s471_s13, 2  ;;  %v270_v48 = vunpack.c.l.s4 %v403_v47 }
   0xd   : > { %s191_s17 = scalar_lea.vmem %s466_s0, %s378_s14  ;;  %s195_s21 = scalar_lea.vmem %s467_s1, %s372_s18 }
   0xe   : > { %v205_v0 = vld [vmem:[%s191_s17] sm:$0xff]  ;;  %s199_s24 = scalar_lea.vmem %s468_s2, %s372_s18  ;;  %v271_v50 = vunpack.c.0.s8 %v270_v48  ;;  %s204_s27 = scalar_lea.vmem %s469_s3, %s378_s14 }
   0xf   : > { %v440_v1 = vmax.f32 %v205_v0, 0.0  ;;  %v260_v41 = vld [vmem:[%s195_s21] sm:$0xf] }
  0x10   : > { %v261_v45 = vld [vmem:[%s199_s24] sm:$0xf] }
  0x11   : > { %208 = vst [vmem:[#allocation1] ss:$2 sm:$0xff] %v440_v1 }
  0x18   : > { %v209_v2 = vld.sshfl [vmem:[#allocation1] sm:$0xff pattern:$0x75316420]  ;;  %v210_v3 = vld.sshfl [vmem:[#allocation1 + $0x8] sm:$0xff pattern:$0x75316420] }
  0x19   : > { %v214_v4 = vsel %vm213_vm0, %v209_v2, 0.0  ;;  %v215_v5 = vsel %vm213_vm0, %v210_v3, 0.0 }
  0x1a   : > { %v216_v6 = vadd.f32 %v215_v5, %v214_v4 }
  0x1c   : > { %217 = vadd.xlane.f32.xlu0 %v216_v6 }
  0x8f   : > { %v218_v7 = vpop.xlane.xlu0 %217 }
  0x90   : > { %v219_v8 = vsel %vm213_vm0, %v218_v7, 0.0 }
  0x91   : > { %v220_v9 = vrot.slane %v219_v8, 4 }
  0x93   : > { %v221_v10 = vadd.f32 %v220_v9, %v219_v8 }
  0x95   : > { %v222_v11 = vrot.slane %v221_v10, 2 }
  0x97   : > { %v223_v12 = vadd.f32 %v222_v11, %v221_v10 }
  0x99   : > { %v224_v13 = vrot.slane %v223_v12, 1 }
  0x9b   : > { %v225_v14 = vadd.f32 %v224_v13, %v223_v12 }
  0x9d   : > { %v226_v15 = vmul.f32 0.0009765625, %v225_v14 }
  0x9f   : > { %v227_v16 = vsub.f32 %v440_v1, %v226_v15 }
  0xa1   : > { %v228_v17 = vmul.f32 %v227_v16, %v227_v16 }
  0xa3   : > { %230 = vst [vmem:[#allocation1] ss:$2 sm:$0xff] %v228_v17 }
  0xaa   : > { %v231_v18 = vld.sshfl [vmem:[#allocation1] sm:$0xff pattern:$0x75316420]  ;;  %v232_v19 = vld.sshfl [vmem:[#allocation1 + $0x8] sm:$0xff pattern:$0x75316420] }
  0xab   : > { %v235_v20 = vsel %vm213_vm0, %v231_v18, 0.0  ;;  %v236_v21 = vsel %vm213_vm0, %v232_v19, 0.0 }
  0xac   : > { %v237_v22 = vadd.f32 %v236_v21, %v235_v20 }
  0xae   : > { %238 = vadd.xlane.f32.xlu0 %v237_v22 }
 0x121   : > { %v239_v24 = vpop.xlane.xlu0 %238 }
 0x122   : > { %v240_v25 = vsel %vm213_vm0, %v239_v24, 0.0 }
 0x123   : > { %v241_v26 = vrot.slane %v240_v25, 4 }
 0x125   : > { %v242_v27 = vadd.f32 %v241_v26, %v240_v25 }
 0x127   : > { %v243_v28 = vrot.slane %v242_v27, 2 }
 0x129   : > { %v244_v29 = vadd.f32 %v243_v28, %v242_v27 }
 0x12b   : > { %v245_v30 = vrot.slane %v244_v29, 1 }
 0x12d   : > { %v246_v31 = vadd.f32 %v245_v30, %v244_v29 }
 0x12f   : > { %v247_v32 = vmul.f32 0.0009765625, %v246_v31 }
 0x131   : > { %v248_v33 = vmax.f32 %v247_v32, 0.0 }
 0x133   : > { %v249_v34 = vadd.f32 1e-05, %v248_v33 }
 0x135   : > { %392 = vrsqrt.f32 %v249_v34  ;;  %vm256_vm2 = vweird.f32 %v249_v34 }
 0x13b   : > { %v393_v35 = vpop.eup %392 }
 0x13c   : > { %v251_v36 = vmul.f32 %v393_v35, %v249_v34  ;;  %vm257_vm1 = vweird.f32 %v393_v35 }
 0x13d   : > { %vm258_vm3 = vmor %vm256_vm2, %vm257_vm1 }
 0x13e   : > { %v252_v37 = vmul.f32 %v393_v35, %v251_v36 }
 0x140   : > { %v253_v38 = vmul.f32 0.5, %v252_v37 }
 0x142   : > { %v254_v39 = vsub.f32 1.5, %v253_v38 }
 0x144   : > { %v255_v40 = vmul.f32 %v393_v35, %v254_v39 }
 0x146   : > { %v259_v42 = vsel %vm258_vm3, %v393_v35, %v255_v40 }
 0x147   : > { %v262_v43 = vmul.f32 %v260_v41, %v259_v42 }
 0x149   : > { %267 = vperm.xlu1 %390, %v262_v43   ;;  %v263_v44 = vmul.f32 %v262_v43, %v226_v15 }
 0x14b   : > { %v264_v46 = vsub.f32 %v261_v45, %v263_v44 }
 0x151   : > { %277 = vperm.xlu1 %390, %v264_v46  }
 0x1bb   : > { %v268_v49 = vpop.permute.xlu1 %267 }
 0x1bc   : > { %v272_v51 = vperm.slane %v268_v49, %v271_v50 }
 0x1be   : > { %v274_v53 = vmul.f32 %v272_v51, %v440_v1 }
 0x1c3   : > { %v278_v52 = vpop.permute.xlu1 %277 }
 0x1c4   : > { %v282_v54 = vperm.slane %v278_v52, %v271_v50 }
 0x1c6   : > { %v284_v55 = vadd.f32 %v282_v54, %v274_v53 }
 0x1c8   : > { %285 = vst [vmem:[%s204_s27] sm:$0xff] %v284_v55 }
 0x1c9 PF: > { %s13_s12 = sadd.s32 1, %s400_s12  }
 0x1ca   : > { %p10_p4 = scmp.ge.s32.totalorder %s13_s12, 4  }
 0x1cc   :  { %12 = sbr.rel (!%p10_p4) target bundleno = 1 (0x1), region = 68 }

</bundles_post_ra>
